<compile_context>
chip_gen: v6e
topology: v6e:2x2x1
jax: 0.10.0
libtpu: 0.0.40
codegen_flags: <defaults>
</compile_context>

<pallas_src>
import functools

import jax
import jax.numpy as jnp
from jax.experimental import pallas as pl
from jax.experimental.pallas import tpu as pltpu

MODEL_NUM = 8     # model_num  (ensemble size N)
LAYER_NUM = 2     # layer_num


def _round_up(x, m):
    return ((x + m - 1) // m) * m


def _tpu_generation(default=6):
    """Best-effort TPU generation (4/5/6/7). Perf-only; numerics unaffected.
    Matches 'TPU v5e', 'TPU v5 lite', 'TPU v6e', 'TPU7x', 'TPU v7x', ..."""
    try:
        kind = jax.devices()[0].device_kind.lower()
    except Exception:
        return default
    for gen in (7, 6, 5, 4):
        if str(gen) in kind:
            return gen
    return default


def _w_network_kernel(x_ref, w_ref, o_ref, *, layer_num):
    # x_ref: (tm, lanes) lane-dense tile; each row holds `pack` original
    #        parameter rows side by side along the lane axis.
    # w_ref: (layer_num, lanes, lanes) block-diagonal weight stack, resident
    #        in VMEM for the whole grid (constant index_map -> no re-DMA).
    x = x_ref[...]
    for l in range(layer_num):   # static unroll -- layer_num is a Python int
        x = jnp.tanh(jnp.dot(x, w_ref[l], preferred_element_type=jnp.float32))
    # Residual: re-read the (still valid) input buffer instead of keeping a
    # full-tile x0 live across both matmul+tanh layers.
    o_ref[...] = x_ref[...] + x


@functools.lru_cache(maxsize=None)
def _build_pallas_call(layer_num, mp, lanes, tm, grid_m, vmem_limit_bytes,
                       single_buffer_weights):
    kernel = functools.partial(_w_network_kernel, layer_num=layer_num)
    if single_buffer_weights:
        # Constant index_map -> the weight block is never re-fetched; 1-deep
        # buffering frees the redundant second buffer (VMEM headroom for tm).
        w_spec = pl.BlockSpec((layer_num, lanes, lanes), lambda i: (0, 0, 0),
                              pipeline_mode=pl.Buffered(1))
    else:
        w_spec = pl.BlockSpec((layer_num, lanes, lanes), lambda i: (0, 0, 0))
    return pl.pallas_call(
        kernel,
        out_shape=jax.ShapeDtypeStruct((mp, lanes), jnp.float32),
        grid_spec=pltpu.PrefetchScalarGridSpec(
            num_scalar_prefetch=0,
            grid=(grid_m,),
            in_specs=[pl.BlockSpec((tm, lanes), lambda i: (i, 0)), w_spec],
            out_specs=pl.BlockSpec((tm, lanes), lambda i: (i, 0)),
        ),
        compiler_params=pltpu.CompilerParams(
            dimension_semantics=("parallel",),   # shard M over v7x's 2 TCs
            vmem_limit_bytes=vmem_limit_bytes,
        ),
    )


def _mlp_tanh(x2d, w_stack):
    h = x2d
    for l in range(w_stack.shape[0]):
        h = jnp.tanh(h @ w_stack[l])
    return h


def w_network_forward(param_x, w_stack, *, target_block_bytes=None):
    """Pallas implementation of W_network_NonLinear.forward
    (channel_wise=0, residual=True, non_linearity=True, col_normalize=False).

    param_x: (b, N) or (out_c, in_c, w, h, N), float32, ensemble dim N last
    w_stack: (layer_num, N, N) stacked W_base parameters
    """
    orig_shape = param_x.shape
    n = int(orig_shape[-1])
    layer_num = int(w_stack.shape[0])
    gen = _tpu_generation()
    if target_block_bytes is None:
        # ~4 MiB blocks on v6e/v7x (explicit scoped-VMEM limit below), ~2 MiB
        # on v5e and older (16 MiB scoped-VMEM default).
        target_block_bytes = (4 << 20) if gen >= 6 else (2 << 20)

    x2d = param_x.reshape(-1, n)          # channel_wise==0 glue reshape (free)
    m = x2d.shape[0]

    # ---- lane-friendliness fallback for N that does not divide 128 ----------
    # Pad N with zero columns so pack*N can hit a multiple of 128 (unmasked
    # stores).  Extra terms are exact zeros -> numerically identical.  Never
    # taken for this module's power-of-two model_num.
    n_eff = n
    if n < 128 and 128 % n != 0:
        n_eff = 1 << (n - 1).bit_length()          # next pow2 (divides 128)
    elif n > 128 and n % 128 != 0:
        n_eff = _round_up(n, 128)
    if n_eff != n:
        x2d = jnp.pad(x2d, ((0, 0), (0, n_eff - n)))
        w_eff = jnp.pad(w_stack, ((0, 0), (0, n_eff - n), (0, n_eff - n)))
    else:
        w_eff = w_stack

    # ---- pack selection (divisibility-first) --------------------------------
    # Fold `pack` consecutive rows onto the lane axis so the last dim is
    # 128/256 wide.  Prefer a pack that divides m so the repack stays a free,
    # copy-less row-major reshape (no whole-array pad, no output slice).
    lane_prefs = (256, 128) if gen >= 6 else (128, 256)
    packs = []
    for lw in lane_prefs:
        if lw >= n_eff and lw % n_eff == 0 and (lw // n_eff) not in packs:
            packs.append(lw // n_eff)
    if not packs:
        packs = [1]                                # N already lane-sized
    pack = next((p for p in packs if m % p == 0), packs[0])
    m_tail = m % pack                              # 0 in the common path
    m_main = m - m_tail
    lanes = pack * n_eff

    if m_main == 0:
        # Degenerate tiny input (< pack rows): pure JAX, not worth a kernel.
        out2d = x2d + _mlp_tanh(x2d, w_eff)
        if n_eff != n:
            out2d = out2d[:, :n]
        return out2d.reshape(orig_shape)

    x_main = x2d if m_tail == 0 else x2d[:m_main]
    xp = x_main.reshape(-1, lanes)                 # free row-major reshape
    mp = xp.shape[0]

    # Block-diagonal weights: `pack` copies of the (n_eff, n_eff) W along the
    # diagonal.  Extra accumulation terms are exact zeros -> identical result.
    if pack > 1:
        eye_pack = jnp.eye(pack, dtype=w_eff.dtype)
        w_packed = jnp.einsum("ij,lab->liajb", eye_pack, w_eff)
        w_packed = w_packed.reshape(layer_num, lanes, lanes)
    else:
        w_packed = w_eff

    # ---- M tiling: single full-array block if it fits the budget, otherwise
    #      8-aligned blocks with a ragged (clamped-read / masked-write) last
    #      block.  No row padding in either case -> out_shape == packed shape.
    row_bytes = 4 * lanes
    if mp <= 8 or mp * row_bytes <= target_block_bytes:
        tm, grid_m = mp, 1
    else:
        tm = max(8, min(mp // 8 * 8,
                        (target_block_bytes // row_bytes) // 8 * 8))
        grid_m = pl.cdiv(mp, tm)

    vmem_limit = (48 << 20) if gen >= 6 else None
    try:
        call = _build_pallas_call(layer_num, mp, lanes, tm, grid_m,
                                  vmem_limit, True)
        out_main = call(xp, w_packed)
    except Exception:
        # Fallback if this JAX version rejects 1-deep (single-buffered) specs.
        call = _build_pallas_call(layer_num, mp, lanes, tm, grid_m,
                                  vmem_limit, False)
        out_main = call(xp, w_packed)

    out2d = out_main.reshape(-1, n_eff)            # free row-major reshape
    if m_tail:
        # < pack leftover rows (at most 31): tiny pure-JAX tail, then stitch.
        x_tail = x2d[m_main:]
        out_tail = x_tail + _mlp_tanh(x_tail, w_eff)
        out2d = jnp.concatenate([out2d, out_tail], axis=0)
    if n_eff != n:
        out2d = out2d[:, :n]
    return out2d.reshape(orig_shape)


def _reference(param_x, w_stack):
    """Pure-JAX reference mirroring the PyTorch forward exactly."""
    x2d = param_x.reshape(-1, param_x.shape[-1])
    return (x2d + _mlp_tanh(x2d, w_stack)).reshape(param_x.shape)


if __name__ == "__main__":
    key = jax.random.PRNGKey(0)
    kx, kw, kb, kc, kd = jax.random.split(key, 5)

    # Module __init__ (residual, channel_wise=0) zero-inits each W_base[l];
    # use small random values instead so the matmul/tanh path is exercised.
    w_stack = 0.1 * jax.random.normal(
        kw, (LAYER_NUM, MODEL_NUM, MODEL_NUM), dtype=jnp.float32)

    # 1) 5-D "conv weight" style input (layer_type == 2): 4*4*3*3 = 144 rows,
    #    divisible by the pack factor -> fully copy-free common path.
    px1 = jax.random.normal(kx, (4, 4, 3, 3, MODEL_NUM), dtype=jnp.float32)
    o1 = w_network_forward(px1, w_stack)
    jax.block_until_ready(o1)
    assert o1.shape == px1.shape and o1.dtype == jnp.float32
    assert jnp.allclose(o1, _reference(px1, w_stack), atol=1e-5, rtol=1e-5)

    # 2) 2-D "bias" style input (layer_type == 1) with 37 rows (no lane-dense
    #    pack divides it) -> exercises the prefix-kernel + pure-JAX tail path.
    px2 = jax.random.normal(kb, (37, MODEL_NUM), dtype=jnp.float32)
    o2 = w_network_forward(px2, w_stack)
    jax.block_until_ready(o2)
    assert o2.shape == px2.shape
    assert jnp.allclose(o2, _reference(px2, w_stack), atol=1e-5, rtol=1e-5)

    # 3) model_num that does not divide 128 -> exercises the zero-column
    #    lane-padding fallback (output last dim stays a multiple of 128).
    n3 = 12
    w3 = 0.1 * jax.random.normal(kc, (LAYER_NUM, n3, n3), dtype=jnp.float32)
    px3 = jax.random.normal(kd, (40, n3), dtype=jnp.float32)
    o3 = w_network_forward(px3, w3)
    jax.block_until_ready(o3)
    assert jnp.allclose(o3, _reference(px3, w3), atol=1e-5, rtol=1e-5)

    # 4) Force the multi-block pipeline with a ragged last block via a tiny
    #    block budget (1040 rows -> 65 packed rows, 16-row blocks, last block
    #    partial) to validate clamped reads / masked writes.
    px4 = jax.random.normal(kx, (1040, MODEL_NUM), dtype=jnp.float32)
    o4 = w_network_forward(px4, w_stack, target_block_bytes=8 * 1024)
    jax.block_until_ready(o4)
    assert jnp.allclose(o4, _reference(px4, w_stack), atol=1e-5, rtol=1e-5)

    # TODO(synk): channel_wise=1/2 and col_normalize branches are pure
    # reshape/permute glue + column-normalized weights; not wired here.
    print("KERNEL_OK")
</pallas_src>

<mosaic_0001>
module attributes {stable_mosaic.version = 11 : i64} {
  func.func @_w_network_kernel(%arg0: i32, %arg1: memref<9x128xf32, #tpu.memory_space<vmem>>, %arg2: memref<2x128x128xf32, #tpu.memory_space<vmem>>, %arg3: memref<9x128xf32, #tpu.memory_space<vmem>>) attributes {dimension_semantics = [#tpu.dimension_semantics<parallel>], iteration_bounds = array<i64: 1>, scalar_prefetch = 0 : i64, scratch_operands = 0 : i64, tpu.core_type = #tpu.core_type<tc>, window_params = [{transform_indices = @transform_0, window_bounds = array<i64: 9, 128>}, {pipeline_mode = #tpu.pipeline_mode<synchronous>, transform_indices = @transform_1, window_bounds = array<i64: 2, 128, 128>}, {transform_indices = @transform_2, window_bounds = array<i64: 9, 128>}]} {
    %c0 = arith.constant 0 : index
    %c0_0 = arith.constant 0 : index
    %0 = vector.load %arg1[%c0, %c0_0] : memref<9x128xf32, #tpu.memory_space<vmem>>, vector<9x128xf32>
    %c0_1 = arith.constant 0 : index
    %c0_2 = arith.constant 0 : index
    %c0_3 = arith.constant 0 : index
    %1 = vector.load %arg2[%c0_1, %c0_2, %c0_3] : memref<2x128x128xf32, #tpu.memory_space<vmem>>, vector<1x128x128xf32>
    %2 = vector.shape_cast %1 : vector<1x128x128xf32> to vector<128x128xf32>
    %cst = arith.constant dense<0.000000e+00> : vector<9x128xf32>
    %3 = tpu.matmul %0, %2, %cst {dimension_numbers = #tpu.dot_dimension_numbers<[1], [0], [0], [1], [0, 0, 1, 1], [], []>} : vector<9x128xf32>, vector<128x128xf32>, vector<9x128xf32> -> vector<9x128xf32>
    %4 = math.tanh %3 : vector<9x128xf32>
    %c1 = arith.constant 1 : index
    %c0_4 = arith.constant 0 : index
    %c0_5 = arith.constant 0 : index
    %5 = vector.load %arg2[%c1, %c0_4, %c0_5] : memref<2x128x128xf32, #tpu.memory_space<vmem>>, vector<1x128x128xf32>
    %6 = vector.shape_cast %5 : vector<1x128x128xf32> to vector<128x128xf32>
    %cst_6 = arith.constant dense<0.000000e+00> : vector<9x128xf32>
    %7 = tpu.matmul %4, %6, %cst_6 {dimension_numbers = #tpu.dot_dimension_numbers<[1], [0], [0], [1], [0, 0, 1, 1], [], []>} : vector<9x128xf32>, vector<128x128xf32>, vector<9x128xf32> -> vector<9x128xf32>
    %8 = math.tanh %7 : vector<9x128xf32>
    %c0_7 = arith.constant 0 : index
    %c0_8 = arith.constant 0 : index
    %9 = vector.load %arg1[%c0_7, %c0_8] : memref<9x128xf32, #tpu.memory_space<vmem>>, vector<9x128xf32>
    %10 = arith.addf %9, %8 : vector<9x128xf32>
    %c0_9 = arith.constant 0 : index
    %c0_10 = arith.constant 0 : index
    %11 = vector.load %arg3[%c0_9, %c0_10] : memref<9x128xf32, #tpu.memory_space<vmem>>, vector<9x128xf32>
    tpu.vector_store %arg3[%c0_9, %c0_10], %10 {strides = array<i32>} : memref<9x128xf32, #tpu.memory_space<vmem>>, vector<9x128xf32>,
    return
  }
  func.func @transform_0(%arg0: i32) -> (i32, i32) {
    %c0_i32 = arith.constant 0 : i32
    %c0_i32_0 = arith.constant 0 : i32
    return %arg0, %c0_i32 : i32, i32
  }
  func.func @transform_1(%arg0: i32) -> (i32, i32, i32) {
    %c0_i32 = arith.constant 0 : i32
    %c0_i32_0 = arith.constant 0 : i32
    %c0_i32_1 = arith.constant 0 : i32
    %c0_i32_2 = arith.constant 0 : i32
    return %c0_i32, %c0_i32_0, %c0_i32_1 : i32, i32, i32
  }
  func.func @transform_2(%arg0: i32) -> (i32, i32) {
    %c0_i32 = arith.constant 0 : i32
    %c0_i32_0 = arith.constant 0 : i32
    return %arg0, %c0_i32 : i32, i32
  }
}

module attributes {stable_mosaic.version = 11 : i64} {
  func.func @_w_network_kernel(%arg0: i32, %arg1: memref<9x128xf32, #tpu.memory_space<vmem>>, %arg2: memref<2x128x128xf32, #tpu.memory_space<vmem>>, %arg3: memref<9x128xf32, #tpu.memory_space<vmem>>) attributes {dimension_semantics = [#tpu.dimension_semantics<parallel>], iteration_bounds = array<i64: 1>, scalar_prefetch = 0 : i64, scratch_operands = 0 : i64, tpu.core_type = #tpu.core_type<tc>, window_params = [{transform_indices = @transform_0, window_bounds = array<i64: 9, 128>}, {pipeline_mode = #tpu.pipeline_mode<synchronous>, transform_indices = @transform_1, window_bounds = array<i64: 2, 128, 128>}, {transform_indices = @transform_2, window_bounds = array<i64: 9, 128>}]} {
    %c0 = arith.constant 0 : index
    %c0_0 = arith.constant 0 : index
    %0 = vector.load %arg1[%c0, %c0_0] : memref<9x128xf32, #tpu.memory_space<vmem>>, vector<9x128xf32>
    %c0_1 = arith.constant 0 : index
    %c0_2 = arith.constant 0 : index
    %c0_3 = arith.constant 0 : index
    %1 = vector.load %arg2[%c0_1, %c0_2, %c0_3] : memref<2x128x128xf32, #tpu.memory_space<vmem>>, vector<1x128x128xf32>
    %2 = vector.shape_cast %1 : vector<1x128x128xf32> to vector<128x128xf32>
    %cst = arith.constant dense<0.000000e+00> : vector<9x128xf32>
    %3 = tpu.matmul %0, %2, %cst {dimension_numbers = #tpu.dot_dimension_numbers<[1], [0], [0], [1], [0, 0, 1, 1], [], []>} : vector<9x128xf32>, vector<128x128xf32>, vector<9x128xf32> -> vector<9x128xf32>
    %4 = math.tanh %3 : vector<9x128xf32>
    %c1 = arith.constant 1 : index
    %c0_4 = arith.constant 0 : index
    %c0_5 = arith.constant 0 : index
    %5 = vector.load %arg2[%c1, %c0_4, %c0_5] : memref<2x128x128xf32, #tpu.memory_space<vmem>>, vector<1x128x128xf32>
    %6 = vector.shape_cast %5 : vector<1x128x128xf32> to vector<128x128xf32>
    %cst_6 = arith.constant dense<0.000000e+00> : vector<9x128xf32>
    %7 = tpu.matmul %4, %6, %cst_6 {dimension_numbers = #tpu.dot_dimension_numbers<[1], [0], [0], [1], [0, 0, 1, 1], [], []>} : vector<9x128xf32>, vector<128x128xf32>, vector<9x128xf32> -> vector<9x128xf32>
    %8 = math.tanh %7 : vector<9x128xf32>
    %c0_7 = arith.constant 0 : index
    %c0_8 = arith.constant 0 : index
    %9 = vector.load %arg1[%c0_7, %c0_8] : memref<9x128xf32, #tpu.memory_space<vmem>>, vector<9x128xf32>
    %10 = arith.addf %9, %8 : vector<9x128xf32>
    %c0_9 = arith.constant 0 : index
    %c0_10 = arith.constant 0 : index
    %11 = vector.load %arg3[%c0_9, %c0_10] : memref<9x128xf32, #tpu.memory_space<vmem>>, vector<9x128xf32>
    tpu.vector_store %arg3[%c0_9, %c0_10], %10 {strides = array<i32>} : memref<9x128xf32, #tpu.memory_space<vmem>>, vector<9x128xf32>,
    return
  }
  func.func @transform_0(%arg0: i32) -> (i32, i32) {
    %c0_i32 = arith.constant 0 : i32
    %c0_i32_0 = arith.constant 0 : i32
    return %arg0, %c0_i32 : i32, i32
  }
  func.func @transform_1(%arg0: i32) -> (i32, i32, i32) {
    %c0_i32 = arith.constant 0 : i32
    %c0_i32_0 = arith.constant 0 : i32
    %c0_i32_1 = arith.constant 0 : i32
    %c0_i32_2 = arith.constant 0 : i32
    return %c0_i32, %c0_i32_0, %c0_i32_1 : i32, i32, i32
  }
  func.func @transform_2(%arg0: i32) -> (i32, i32) {
    %c0_i32 = arith.constant 0 : i32
    %c0_i32_0 = arith.constant 0 : i32
    return %arg0, %c0_i32 : i32, i32
  }
}

</mosaic_0001>

<bundles_post_ra>
// kernel: tpu_custom_call.1
= control target key start
LH: loop header
LB: loop body
LE: loop exit
PB: predicated region body
PF: predicated region fallthrough
CT: control target
= control target key end

     0   :  { %7 = vsyncpa [#allocation3], 0  ;;  %s478_s0 = inlined_call_operand.hbm [shape: f32[9,128], index: 0, kind: input, shape index: {}]   ;;  %s479_s1 = inlined_call_operand.hbm [shape: f32[2,128,128], index: 1, kind: input, shape index: {}]   ;;  %s480_s2 = inlined_call_operand.hbm [shape: f32[9,128], index: 2, kind: output, shape index: {}]  }
   0x1   :  { %8 = vsyncpa [#allocation6], 0 }
   0x2   :  { %9 = vsyncpa [#allocation4], 0  ;;  %s436_s9 = smov [#allocation2]  }
   0x3   :  { %s15_s10 = sshll.u32 %s436_s9, 4  ;;  %s16_s10 = int_to_ptr.vmem [resolvable:$true] %s15_s10 }
   0x4   :  { %s378_s11 = scalar_lea.vmem %s16_s10, 256  ;;  %p383_p1 = scmp.lt.s32.totalorder %s16_s10, %s16_s10 }
   0x5   :  { %p379_p0 = scmp.ne.s32.totalorder %s16_s10, %s378_s11  ;;  %p384_p2 = scmp.lt.s32.totalorder %s378_s11, %s378_s11 }
   0x7   :  { %p385_p3 = por %p384_p2, %p383_p1 }
   0x9   :  { %p386_p4 = pnand %p385_p3, %p379_p0 }
   0xb   :  { %389 = shalt.err (!%p386_p4)
}
   0xc   :  { %s437_s12 = smov 128   ;;  %s438_s13 = smov 8  }
   0xd   :  { %21 = dma.hbm_to_vmem [thread:$0]  %s478_s0, 256, %s16_s10, [#allocation3], %s437_s12, %s437_s12, %s438_s13  }
   0xe   :  { %s439_s16 = smov [#allocation5]  }
   0xf   :  { %s27_s17 = sshll.u32 %s439_s16, 4  ;;  %s28_s17 = int_to_ptr.vmem [resolvable:$true] %s27_s17 }
  0x10   :  { %s398_s18 = scalar_lea.vmem %s28_s17, 4096  ;;  %p403_p6 = scmp.lt.s32.totalorder %s28_s17, %s28_s17 }
  0x11   :  { %p399_p5 = scmp.ne.s32.totalorder %s28_s17, %s398_s18  ;;  %p404_p7 = scmp.lt.s32.totalorder %s398_s18, %s398_s18 }
  0x13   :  { %p405_p8 = por %p404_p7, %p403_p6 }
  0x15   :  { %p406_p9 = pnand %p405_p8, %p399_p5 }
  0x17   :  { %409 = shalt.err (!%p406_p9)
}
  0x18   :  { %33 = dma.hbm_to_vmem [thread:$0]  %s479_s1, 4096, %s28_s17, [#allocation6], %s437_s12, %s437_s12, %s438_s13  }
  0x19   :  { %430 = dma.done.wait [#allocation3], 256  }
  0x1a   :  { %431 = vsyncadd [#allocation3], 4294967040 }
  0x1b   :  { %432 = dma.done.wait [#allocation6], 4096  }
  0x1c   :  { %433 = vsyncadd [#allocation6], 4294963200  ;;  %v57_v0 = vld [vmem:[#allocation5 + $0x78] sm:$0xff]  ;;  %v56_v1 = vld [vmem:[#allocation5 + $0x70] sm:$0xff]  ;;  %s440_s0 = smov [#allocation7]  }
  0x1d   :  { %287 = vmatprep.subr.mxu0 %v57_v0  ;;  %v55_v2 = vld [vmem:[#allocation5 + $0x68] sm:$0xff]  ;;  %v54_v3 = vld [vmem:[#allocation5 + $0x60] sm:$0xff]  ;;  %v468_v4 = vld [vmem:[#allocation2] sm:$0xff]  ;;  %s238_s1 = sshll.u32 %s440_s0, 4  ;;  %s239_s1 = int_to_ptr.vmem [resolvable:$true] %s238_s1 }
  0x1e   :  { %288 = vmatpush3.msra.mxu0 %v57_v0  ;;  %v53_v5 = vld [vmem:[#allocation5 + $0x58] sm:$0xff]  ;;  %319 = vmatprep.mubr.f32.mxu0 %v468_v4  ;;  %v150_v7 = vld [vmem:[#allocation5 + $0xf0] sm:$0xff]  ;;  %v149_v9 = vld [vmem:[#allocation5 + $0xe8] sm:$0xff]  ;;  %s410_s21 = scalar_lea.vmem %s239_s1, 256  ;;  %p415_p11 = scmp.lt.s32.totalorder %s239_s1, %s239_s1 }
  0x1f   :  { %289 = vmatprep.subr.mxu0 %v56_v1  ;;  %v151_v6 = vld [vmem:[#allocation5 + $0xf8] sm:$0xff]  ;;  %v52_v8 = vld [vmem:[#allocation5 + $0x50] sm:$0xff]  ;;  %v51_v10 = vld [vmem:[#allocation5 + $0x48] sm:$0xff]  ;;  %p411_p10 = scmp.ne.s32.totalorder %s239_s1, %s410_s21  ;;  %p416_p12 = scmp.lt.s32.totalorder %s410_s21, %s410_s21 }
  0x20   :  { %290 = vmatpush3.msra.mxu0 %v56_v1  ;;  %322 = vmatprep.subr.mxu1 %v151_v6  ;;  %v148_v11 = vld [vmem:[#allocation5 + $0xe0] sm:$0xff]  ;;  %v147_v13 = vld [vmem:[#allocation5 + $0xd8] sm:$0xff]  ;;  %v146_v15 = vld [vmem:[#allocation5 + $0xd0] sm:$0xff] }
  0x21   :  { %291 = vmatprep.subr.mxu0 %v55_v2  ;;  %323 = vmatpush3.msra.mxu1 %v151_v6  ;;  %v50_v12 = vld [vmem:[#allocation5 + $0x40] sm:$0xff]  ;;  %v49_v14 = vld [vmem:[#allocation5 + $0x38] sm:$0xff]  ;;  %v48_v16 = vld [vmem:[#allocation5 + $0x30] sm:$0xff]  ;;  %p417_p13 = por %p416_p12, %p415_p11 }
  0x22   :  { %292 = vmatpush3.msra.mxu0 %v55_v2  ;;  %324 = vmatprep.subr.mxu1 %v150_v7  ;;  %v145_v17 = vld [vmem:[#allocation5 + $0xc8] sm:$0xff]  ;;  %v46_v19 = vld [vmem:[#allocation5 + $0x20] sm:$0xff]  ;;  %v45_v20 = vld [vmem:[#allocation5 + $0x18] sm:$0xff] }
  0x23   :  { %293 = vmatprep.subr.mxu0 %v54_v3  ;;  %325 = vmatpush3.msra.mxu1 %v150_v7  ;;  %v47_v18 = vld [vmem:[#allocation5 + $0x28] sm:$0xff]  ;;  %v44_v21 = vld [vmem:[#allocation5 + $0x10] sm:$0xff]  ;;  %v42_v23 = vld [vmem:[#allocation5] sm:$0xff]  ;;  %p418_p0 = pnand %p417_p13, %p411_p10 }
  0x24   :  { %294 = vmatpush3.msra.mxu0 %v54_v3  ;;  %326 = vmatprep.subr.mxu1 %v149_v9  ;;  %v43_v22 = vld [vmem:[#allocation5 + $0x8] sm:$0xff]  ;;  %v41_v24 = vld [vmem:[#allocation2 + $0x8] sm:$0x1]  ;;  %v144_v25 = vld [vmem:[#allocation5 + $0xc0] sm:$0xff] }
  0x25   :  { %295 = vmatprep.subr.mxu0 %v53_v5  ;;  %327 = vmatpush3.msra.mxu1 %v149_v9  ;;  %v143_v26 = vld [vmem:[#allocation5 + $0xb8] sm:$0xff]  ;;  %v142_v27 = vld [vmem:[#allocation5 + $0xb0] sm:$0xff]  ;;  %v141_v28 = vld [vmem:[#allocation5 + $0xa8] sm:$0xff] }
  0x26   :  { %296 = vmatpush3.msra.mxu0 %v53_v5  ;;  %328 = vmatprep.subr.mxu1 %v148_v11  ;;  %v140_v29 = vld [vmem:[#allocation5 + $0xa0] sm:$0xff]  ;;  %v139_v30 = vld [vmem:[#allocation5 + $0x98] sm:$0xff]  ;;  %v138_v31 = vld [vmem:[#allocation5 + $0x90] sm:$0xff] }
  0x27   :  { %297 = vmatprep.subr.mxu0 %v52_v8  ;;  %329 = vmatpush3.msra.mxu1 %v148_v11  ;;  %v137_v32 = vld [vmem:[#allocation5 + $0x88] sm:$0xff]  ;;  %v136_v33 = vld [vmem:[#allocation5 + $0x80] sm:$0xff] }
  0x28   :  { %298 = vmatpush3.msra.mxu0 %v52_v8  ;;  %330 = vmatprep.subr.mxu1 %v147_v13 }
  0x29   :  { %299 = vmatprep.subr.mxu0 %v51_v10  ;;  %331 = vmatpush3.msra.mxu1 %v147_v13 }
  0x2a   :  { %300 = vmatpush3.msra.mxu0 %v51_v10  ;;  %332 = vmatprep.subr.mxu1 %v146_v15 }
  0x2b   :  { %301 = vmatprep.subr.mxu0 %v50_v12  ;;  %333 = vmatpush3.msra.mxu1 %v146_v15 }
  0x2c   :  { %302 = vmatpush3.msra.mxu0 %v50_v12  ;;  %334 = vmatprep.subr.mxu1 %v145_v17 }
  0x2d   :  { %303 = vmatprep.subr.mxu0 %v49_v14  ;;  %335 = vmatpush3.msra.mxu1 %v145_v17 }
  0x2e   :  { %304 = vmatpush3.msra.mxu0 %v49_v14  ;;  %336 = vmatprep.subr.mxu1 %v144_v25 }
  0x2f   :  { %305 = vmatprep.subr.mxu0 %v48_v16  ;;  %337 = vmatpush3.msra.mxu1 %v144_v25 }
  0x30   :  { %306 = vmatpush3.msra.mxu0 %v48_v16  ;;  %338 = vmatprep.subr.mxu1 %v143_v26 }
  0x31   :  { %307 = vmatprep.subr.mxu0 %v47_v18  ;;  %339 = vmatpush3.msra.mxu1 %v143_v26 }
  0x32   :  { %308 = vmatpush3.msra.mxu0 %v47_v18  ;;  %340 = vmatprep.subr.mxu1 %v142_v27 }
  0x33   :  { %309 = vmatprep.subr.mxu0 %v46_v19  ;;  %341 = vmatpush3.msra.mxu1 %v142_v27 }
  0x34   :  { %310 = vmatpush3.msra.mxu0 %v46_v19  ;;  %342 = vmatprep.subr.mxu1 %v141_v28 }
  0x35   :  { %311 = vmatprep.subr.mxu0 %v45_v20  ;;  %343 = vmatpush3.msra.mxu1 %v141_v28 }
  0x36   :  { %312 = vmatpush3.msra.mxu0 %v45_v20  ;;  %344 = vmatprep.subr.mxu1 %v140_v29 }
  0x37   :  { %313 = vmatprep.subr.mxu0 %v44_v21  ;;  %345 = vmatpush3.msra.mxu1 %v140_v29 }
  0x38   :  { %314 = vmatpush3.msra.mxu0 %v44_v21  ;;  %346 = vmatprep.subr.mxu1 %v139_v30 }
  0x39   :  { %315 = vmatprep.subr.mxu0 %v43_v22  ;;  %347 = vmatpush3.msra.mxu1 %v139_v30 }
  0x3a   :  { %316 = vmatpush3.msra.mxu0 %v43_v22  ;;  %348 = vmatprep.subr.mxu1 %v138_v31 }
  0x3b   :  { %317 = vmatprep.subr.mxu0 %v42_v23  ;;  %349 = vmatpush3.msra.mxu1 %v138_v31 }
  0x3c   :  { %318 = vmatpush3.msra.mxu0 %v42_v23  ;;  %350 = vmatprep.subr.mxu1 %v137_v32 }
  0x3d   :  { %320 = vmatmul.mubr.f32.vlgmr.msra.gmra.mxu0 %v41_v24  ;;  %351 = vmatpush3.msra.mxu1 %v137_v32 }
  0x3e   :  { %352 = vmatprep.subr.mxu1 %v136_v33 }
  0x3f   :  { %353 = vmatpush3.msra.mxu1 %v136_v33 }
  0xfd   :  { %v321_v34 = vpop.f32.mrf.mxu0 }
  0xff   :  { %v124_v35 = vpop.f32.mrf.mxu0 }
 0x100   :  { %362 = vtanh.f32 %v124_v35 }
 0x101   :  { %364 = vtanh.f32 %v321_v34 }
 0x10d   :  { %v363_v36 = vpop.eup %362 }
 0x10e   :  { %v365_v37 = vpop.eup %364  ;;  %354 = vmatprep.mubr.f32.mxu1 %v363_v36 }
 0x10f   :  { %355 = vmatmul.mubr.f32.vlgmr.msra.gmra.mxu1 %v365_v37 }
 0x1cf   :  { %v356_v38 = vpop.f32.mrf.mxu1 }
 0x1d0   :  { %366 = vtanh.f32 %v356_v38 }
 0x1d1   :  { %v218_v39 = vpop.f32.mrf.mxu1 }
 0x1d2   :  { %368 = vtanh.f32 %v218_v39 }
 0x1dd   :  { %v367_v40 = vpop.eup %366 }
 0x1de   :  { %v230_v41 = vadd.f32 %v367_v40, %v41_v24 }
 0x1df   :  { %v369_v42 = vpop.eup %368 }
 0x1e0   :  { %v229_v43 = vadd.f32 %v369_v42, %v468_v4  ;;  %232 = vst [vmem:[#allocation7 + $0x8] sm:$0x1] %v230_v41 }
 0x1e2   :  { %231 = vst [vmem:[#allocation7] sm:$0xff] %v229_v43 }
 0x1e3   :  { %421 = shalt.err (!%p418_p0)
}
 0x1e4   :  { %244 = dma.vmem_to_hbm [thread:$0]  %s239_s1, 256, %s480_s2, [#allocation4], %s437_s12, %s437_s12, %s438_s13  }
 0x1e5   :  { %434 = dma.done.wait [#allocation4], 256  }
 0x1e6   :  { %435 = vsyncadd [#allocation4], 4294967040 }
 0x1e7   :  { %248 = vsyncpa [#allocation3], 1 }
 0x1e8   :  { %249 = vsyncpa [#allocation6], 1 }
 0x1e9   :  { %250 = vsyncpa [#allocation4], 1 }

// kernel: tpu_custom_call.1
= control target key start
LH: loop header
LB: loop body
LE: loop exit
PB: predicated region body
PF: predicated region fallthrough
CT: control target
= control target key end

     0   :  { %7 = vsyncpa [#allocation3], 0  ;;  %s478_s0 = inlined_call_operand.hbm [shape: f32[9,128], index: 0, kind: input, shape index: {}]   ;;  %s479_s1 = inlined_call_operand.hbm [shape: f32[2,128,128], index: 1, kind: input, shape index: {}]   ;;  %s480_s2 = inlined_call_operand.hbm [shape: f32[9,128], index: 2, kind: output, shape index: {}]  }
   0x1   :  { %8 = vsyncpa [#allocation6], 0 }
   0x2   :  { %9 = vsyncpa [#allocation4], 0  ;;  %s436_s9 = smov [#allocation2]  }
   0x3   :  { %s15_s10 = sshll.u32 %s436_s9, 4  ;;  %s16_s10 = int_to_ptr.vmem [resolvable:$true] %s15_s10 }
   0x4   :  { %s378_s11 = scalar_lea.vmem %s16_s10, 256  ;;  %p383_p1 = scmp.lt.s32.totalorder %s16_s10, %s16_s10 }
   0x5   :  { %p379_p0 = scmp.ne.s32.totalorder %s16_s10, %s378_s11  ;;  %p384_p2 = scmp.lt.s32.totalorder %s378_s11, %s378_s11 }
   0x7   :  { %p385_p3 = por %p384_p2, %p383_p1 }
   0x9   :  { %p386_p4 = pnand %p385_p3, %p379_p0 }
   0xb   :  { %389 = shalt.err (!%p386_p4)
}
   0xc   :  { %s437_s12 = smov 128   ;;  %s438_s13 = smov 8  }
   0xd   :  { %21 = dma.hbm_to_vmem [thread:$0]  %s478_s0, 256, %s16_s10, [#allocation3], %s437_s12, %s437_s12, %s438_s13  }
   0xe   :  { %s439_s16 = smov [#allocation5]  }
   0xf   :  { %s27_s17 = sshll.u32 %s439_s16, 4  ;;  %s28_s17 = int_to_ptr.vmem [resolvable:$true] %s27_s17 }
  0x10   :  { %s398_s18 = scalar_lea.vmem %s28_s17, 4096  ;;  %p403_p6 = scmp.lt.s32.totalorder %s28_s17, %s28_s17 }
  0x11   :  { %p399_p5 = scmp.ne.s32.totalorder %s28_s17, %s398_s18  ;;  %p404_p7 = scmp.lt.s32.totalorder %s398_s18, %s398_s18 }
  0x13   :  { %p405_p8 = por %p404_p7, %p403_p6 }
  0x15   :  { %p406_p9 = pnand %p405_p8, %p399_p5 }
  0x17   :  { %409 = shalt.err (!%p406_p9)
}
  0x18   :  { %33 = dma.hbm_to_vmem [thread:$0]  %s479_s1, 4096, %s28_s17, [#allocation6], %s437_s12, %s437_s12, %s438_s13  }
  0x19   :  { %430 = dma.done.wait [#allocation3], 256  }
  0x1a   :  { %431 = vsyncadd [#allocation3], 4294967040 }
  0x1b   :  { %432 = dma.done.wait [#allocation6], 4096  }
  0x1c   :  { %433 = vsyncadd [#allocation6], 4294963200  ;;  %v57_v0 = vld [vmem:[#allocation5 + $0x78] sm:$0xff]  ;;  %v56_v1 = vld [vmem:[#allocation5 + $0x70] sm:$0xff]  ;;  %s440_s0 = smov [#allocation7]  }
  0x1d   :  { %287 = vmatprep.subr.mxu0 %v57_v0  ;;  %v55_v2 = vld [vmem:[#allocation5 + $0x68] sm:$0xff]  ;;  %v54_v3 = vld [vmem:[#allocation5 + $0x60] sm:$0xff]  ;;  %v468_v4 = vld [vmem:[#allocation2] sm:$0xff]  ;;  %s238_s1 = sshll.u32 %s440_s0, 4  ;;  %s239_s1 = int_to_ptr.vmem [resolvable:$true] %s238_s1 }
  0x1e   :  { %288 = vmatpush3.msra.mxu0 %v57_v0  ;;  %v53_v5 = vld [vmem:[#allocation5 + $0x58] sm:$0xff]  ;;  %319 = vmatprep.mubr.f32.mxu0 %v468_v4  ;;  %v150_v7 = vld [vmem:[#allocation5 + $0xf0] sm:$0xff]  ;;  %v149_v9 = vld [vmem:[#allocation5 + $0xe8] sm:$0xff]  ;;  %s410_s21 = scalar_lea.vmem %s239_s1, 256  ;;  %p415_p11 = scmp.lt.s32.totalorder %s239_s1, %s239_s1 }
  0x1f   :  { %289 = vmatprep.subr.mxu0 %v56_v1  ;;  %v151_v6 = vld [vmem:[#allocation5 + $0xf8] sm:$0xff]  ;;  %v52_v8 = vld [vmem:[#allocation5 + $0x50] sm:$0xff]  ;;  %v51_v10 = vld [vmem:[#allocation5 + $0x48] sm:$0xff]  ;;  %p411_p10 = scmp.ne.s32.totalorder %s239_s1, %s410_s21  ;;  %p416_p12 = scmp.lt.s32.totalorder %s410_s21, %s410_s21 }
  0x20   :  { %290 = vmatpush3.msra.mxu0 %v56_v1  ;;  %322 = vmatprep.subr.mxu1 %v151_v6  ;;  %v148_v11 = vld [vmem:[#allocation5 + $0xe0] sm:$0xff]  ;;  %v147_v13 = vld [vmem:[#allocation5 + $0xd8] sm:$0xff]  ;;  %v146_v15 = vld [vmem:[#allocation5 + $0xd0] sm:$0xff] }
  0x21   :  { %291 = vmatprep.subr.mxu0 %v55_v2  ;;  %323 = vmatpush3.msra.mxu1 %v151_v6  ;;  %v50_v12 = vld [vmem:[#allocation5 + $0x40] sm:$0xff]  ;;  %v49_v14 = vld [vmem:[#allocation5 + $0x38] sm:$0xff]  ;;  %v48_v16 = vld [vmem:[#allocation5 + $0x30] sm:$0xff]  ;;  %p417_p13 = por %p416_p12, %p415_p11 }
  0x22   :  { %292 = vmatpush3.msra.mxu0 %v55_v2  ;;  %324 = vmatprep.subr.mxu1 %v150_v7  ;;  %v145_v17 = vld [vmem:[#allocation5 + $0xc8] sm:$0xff]  ;;  %v46_v19 = vld [vmem:[#allocation5 + $0x20] sm:$0xff]  ;;  %v45_v20 = vld [vmem:[#allocation5 + $0x18] sm:$0xff] }
  0x23   :  { %293 = vmatprep.subr.mxu0 %v54_v3  ;;  %325 = vmatpush3.msra.mxu1 %v150_v7  ;;  %v47_v18 = vld [vmem:[#allocation5 + $0x28] sm:$0xff]  ;;  %v44_v21 = vld [vmem:[#allocation5 + $0x10] sm:$0xff]  ;;  %v42_v23 = vld [vmem:[#allocation5] sm:$0xff]  ;;  %p418_p0 = pnand %p417_p13, %p411_p10 }
  0x24   :  { %294 = vmatpush3.msra.mxu0 %v54_v3  ;;  %326 = vmatprep.subr.mxu1 %v149_v9  ;;  %v43_v22 = vld [vmem:[#allocation5 + $0x8] sm:$0xff]  ;;  %v41_v24 = vld [vmem:[#allocation2 + $0x8] sm:$0x1]  ;;  %v144_v25 = vld [vmem:[#allocation5 + $0xc0] sm:$0xff] }
  0x25   :  { %295 = vmatprep.subr.mxu0 %v53_v5  ;;  %327 = vmatpush3.msra.mxu1 %v149_v9  ;;  %v143_v26 = vld [vmem:[#allocation5 + $0xb8] sm:$0xff]  ;;  %v142_v27 = vld [vmem:[#allocation5 + $0xb0] sm:$0xff]  ;;  %v141_v28 = vld [vmem:[#allocation5 + $0xa8] sm:$0xff] }
  0x26   :  { %296 = vmatpush3.msra.mxu0 %v53_v5  ;;  %328 = vmatprep.subr.mxu1 %v148_v11  ;;  %v140_v29 = vld [vmem:[#allocation5 + $0xa0] sm:$0xff]  ;;  %v139_v30 = vld [vmem:[#allocation5 + $0x98] sm:$0xff]  ;;  %v138_v31 = vld [vmem:[#allocation5 + $0x90] sm:$0xff] }
  0x27   :  { %297 = vmatprep.subr.mxu0 %v52_v8  ;;  %329 = vmatpush3.msra.mxu1 %v148_v11  ;;  %v137_v32 = vld [vmem:[#allocation5 + $0x88] sm:$0xff]  ;;  %v136_v33 = vld [vmem:[#allocation5 + $0x80] sm:$0xff] }
  0x28   :  { %298 = vmatpush3.msra.mxu0 %v52_v8  ;;  %330 = vmatprep.subr.mxu1 %v147_v13 }
  0x29   :  { %299 = vmatprep.subr.mxu0 %v51_v10  ;;  %331 = vmatpush3.msra.mxu1 %v147_v13 }
  0x2a   :  { %300 = vmatpush3.msra.mxu0 %v51_v10  ;;  %332 = vmatprep.subr.mxu1 %v146_v15 }
  0x2b   :  { %301 = vmatprep.subr.mxu0 %v50_v12  ;;  %333 = vmatpush3.msra.mxu1 %v146_v15 }
  0x2c   :  { %302 = vmatpush3.msra.mxu0 %v50_v12  ;;  %334 = vmatprep.subr.mxu1 %v145_v17 }
  0x2d   :  { %303 = vmatprep.subr.mxu0 %v49_v14  ;;  %335 = vmatpush3.msra.mxu1 %v145_v17 }
  0x2e   :  { %304 = vmatpush3.msra.mxu0 %v49_v14  ;;  %336 = vmatprep.subr.mxu1 %v144_v25 }
  0x2f   :  { %305 = vmatprep.subr.mxu0 %v48_v16  ;;  %337 = vmatpush3.msra.mxu1 %v144_v25 }
  0x30   :  { %306 = vmatpush3.msra.mxu0 %v48_v16  ;;  %338 = vmatprep.subr.mxu1 %v143_v26 }
  0x31   :  { %307 = vmatprep.subr.mxu0 %v47_v18  ;;  %339 = vmatpush3.msra.mxu1 %v143_v26 }
  0x32   :  { %308 = vmatpush3.msra.mxu0 %v47_v18  ;;  %340 = vmatprep.subr.mxu1 %v142_v27 }
  0x33   :  { %309 = vmatprep.subr.mxu0 %v46_v19  ;;  %341 = vmatpush3.msra.mxu1 %v142_v27 }
  0x34   :  { %310 = vmatpush3.msra.mxu0 %v46_v19  ;;  %342 = vmatprep.subr.mxu1 %v141_v28 }
  0x35   :  { %311 = vmatprep.subr.mxu0 %v45_v20  ;;  %343 = vmatpush3.msra.mxu1 %v141_v28 }
  0x36   :  { %312 = vmatpush3.msra.mxu0 %v45_v20  ;;  %344 = vmatprep.subr.mxu1 %v140_v29 }
  0x37   :  { %313 = vmatprep.subr.mxu0 %v44_v21  ;;  %345 = vmatpush3.msra.mxu1 %v140_v29 }
  0x38   :  { %314 = vmatpush3.msra.mxu0 %v44_v21  ;;  %346 = vmatprep.subr.mxu1 %v139_v30 }
  0x39   :  { %315 = vmatprep.subr.mxu0 %v43_v22  ;;  %347 = vmatpush3.msra.mxu1 %v139_v30 }
  0x3a   :  { %316 = vmatpush3.msra.mxu0 %v43_v22  ;;  %348 = vmatprep.subr.mxu1 %v138_v31 }
  0x3b   :  { %317 = vmatprep.subr.mxu0 %v42_v23  ;;  %349 = vmatpush3.msra.mxu1 %v138_v31 }
  0x3c   :  { %318 = vmatpush3.msra.mxu0 %v42_v23  ;;  %350 = vmatprep.subr.mxu1 %v137_v32 }
  0x3d   :  { %320 = vmatmul.mubr.f32.vlgmr.msra.gmra.mxu0 %v41_v24  ;;  %351 = vmatpush3.msra.mxu1 %v137_v32 }
  0x3e   :  { %352 = vmatprep.subr.mxu1 %v136_v33 }
  0x3f   :  { %353 = vmatpush3.msra.mxu1 %v136_v33 }
  0xfd   :  { %v321_v34 = vpop.f32.mrf.mxu0 }
  0xff   :  { %v124_v35 = vpop.f32.mrf.mxu0 }
 0x100   :  { %362 = vtanh.f32 %v124_v35 }
 0x101   :  { %364 = vtanh.f32 %v321_v34 }
 0x10d   :  { %v363_v36 = vpop.eup %362 }
 0x10e   :  { %v365_v37 = vpop.eup %364  ;;  %354 = vmatprep.mubr.f32.mxu1 %v363_v36 }
 0x10f   :  { %355 = vmatmul.mubr.f32.vlgmr.msra.gmra.mxu1 %v365_v37 }
 0x1cf   :  { %v356_v38 = vpop.f32.mrf.mxu1 }
 0x1d0   :  { %366 = vtanh.f32 %v356_v38 }
 0x1d1   :  { %v218_v39 = vpop.f32.mrf.mxu1 }
 0x1d2   :  { %368 = vtanh.f32 %v218_v39 }
 0x1dd   :  { %v367_v40 = vpop.eup %366 }
 0x1de   :  { %v230_v41 = vadd.f32 %v367_v40, %v41_v24 }
 0x1df   :  { %v369_v42 = vpop.eup %368 }
 0x1e0   :  { %v229_v43 = vadd.f32 %v369_v42, %v468_v4  ;;  %232 = vst [vmem:[#allocation7 + $0x8] sm:$0x1] %v230_v41 }
 0x1e2   :  { %231 = vst [vmem:[#allocation7] sm:$0xff] %v229_v43 }
 0x1e3   :  { %421 = shalt.err (!%p418_p0)
}
 0x1e4   :  { %244 = dma.vmem_to_hbm [thread:$0]  %s239_s1, 256, %s480_s2, [#allocation4], %s437_s12, %s437_s12, %s438_s13  }
 0x1e5   :  { %434 = dma.done.wait [#allocation4], 256  }
 0x1e6   :  { %435 = vsyncadd [#allocation4], 4294967040 }
 0x1e7   :  { %248 = vsyncpa [#allocation3], 1 }
 0x1e8   :  { %249 = vsyncpa [#allocation6], 1 }
 0x1e9   :  { %250 = vsyncpa [#allocation4], 1 }

</bundles_post_ra>
